<compile_context>
chip_gen: v7x
topology: tpu7x:2x2x1
jax: 0.10.0
libtpu: 0.0.40
codegen_flags: <defaults>
</compile_context>

<pallas_src>
import jax
import jax.numpy as jnp
from jax.experimental import pallas as pl
from jax.experimental.pallas import tpu as pltpu

_COLS = 512            # lane-dense width (multiple of 128)
_MAX_BLOCK_ROWS = 512  # tile height cap (multiple of 8); (512,512) f32 tile = 1 MiB
                       # -> 6 MiB live with default double-buffering (fits every chip)


def _round_up(x, m):
    return (x + m - 1) // m * m


def _circular_ae_kernel(pred_ref, tgt_ref, out_ref):
    # Compute in f32 (avoids awkward bf16 VALU codegen on v5e); traffic stays
    # in the input dtype, which is what matters for this mem-bound op.
    p = pred_ref[...].astype(jnp.float32)
    t = tgt_ref[...].astype(jnp.float32)
    d = jnp.abs(p - t)
    out_ref[...] = jnp.minimum(d, 1.0 - d).astype(out_ref.dtype)


def circular_ae_loss(predicted, target):
    """Pallas TPU implementation of CircularAELoss.forward.

    Args:
      predicted: (B, n_rays, H, W) angles normalized to [0, 1).
      target:    (B, n_rays, H, W) angles normalized to [0, 1).
    Returns:
      ae_loss: (B, n_rays, H, W), same dtype as inputs, no reduction.
    """
    assert predicted.shape == target.shape, "shape mismatch"
    orig_shape = predicted.shape
    dtype = predicted.dtype
    total = predicted.size

    pred_flat = predicted.reshape(-1)
    tgt_flat = target.reshape(-1)

    # Lane-dense slab: pad flat length to a multiple of _COLS, then pick a tile
    # height that is a multiple of 8 (sublane) and divides the padded row count.
    padded_len = _round_up(total, _COLS)
    rows = padded_len // _COLS
    block_rows = min(_MAX_BLOCK_ROWS, _round_up(rows, 8))
    padded_rows = _round_up(rows, block_rows)
    padded_total = padded_rows * _COLS

    if padded_total != total:
        pad = padded_total - total
        pred_flat = jnp.pad(pred_flat, (0, pad))
        tgt_flat = jnp.pad(tgt_flat, (0, pad))

    pred2d = pred_flat.reshape(padded_rows, _COLS)
    tgt2d = tgt_flat.reshape(padded_rows, _COLS)

    grid = (padded_rows // block_rows,)
    tile_spec = pl.BlockSpec((block_rows, _COLS), lambda i: (i, 0))

    out2d = pl.pallas_call(
        _circular_ae_kernel,
        out_shape=jax.ShapeDtypeStruct((padded_rows, _COLS), dtype),
        grid=grid,
        in_specs=[tile_spec, tile_spec],
        out_specs=tile_spec,
        compiler_params=pltpu.CompilerParams(
            # No carried state between grid steps -> parallel (lets v7x shard
            # steps across both TensorCores; neutral on v5e/v6e).
            dimension_semantics=("parallel",),
        ),
    )(pred2d, tgt2d)

    out_flat = out2d.reshape(-1)[:total]
    return out_flat.reshape(orig_shape)


if __name__ == "__main__":
    key = jax.random.PRNGKey(0)
    k1, k2 = jax.random.split(key)
    B, n_rays, H, W = 2, 4, 16, 16
    # Angles normalized to [0, 1), matching the PyTorch module's "1 - diff" wrap.
    predicted = jax.random.uniform(k1, (B, n_rays, H, W), dtype=jnp.float32)
    target = jax.random.uniform(k2, (B, n_rays, H, W), dtype=jnp.float32)

    out = circular_ae_loss(predicted, target)
    jax.block_until_ready(out)

    # Reference check (plain JAX, mirrors the PyTorch forward).
    diff = jnp.abs(predicted - target)
    ref = jnp.minimum(diff, 1.0 - diff)
    assert out.shape == (B, n_rays, H, W)
    assert out.dtype == predicted.dtype
    assert jnp.allclose(out, ref, atol=1e-6), "mismatch vs reference"

    print("KERNEL_OK")
</pallas_src>

<mosaic_0001>
module attributes {stable_mosaic.version = 11 : i64} {
  func.func @_circular_ae_kernel(%arg0: i32, %arg1: memref<8x512xf32, #tpu.memory_space<vmem>>, %arg2: memref<8x512xf32, #tpu.memory_space<vmem>>, %arg3: memref<8x512xf32, #tpu.memory_space<vmem>>) attributes {dimension_semantics = [#tpu.dimension_semantics<parallel>], iteration_bounds = array<i64: 1>, scalar_prefetch = 0 : i64, scratch_operands = 0 : i64, tpu.core_type = #tpu.core_type<tc>, window_params = [{transform_indices = @transform_0, window_bounds = array<i64: 8, 512>}, {transform_indices = @transform_1, window_bounds = array<i64: 8, 512>}, {transform_indices = @transform_2, window_bounds = array<i64: 8, 512>}]} {
    %c0 = arith.constant 0 : index
    %c0_0 = arith.constant 0 : index
    %0 = vector.load %arg1[%c0, %c0_0] : memref<8x512xf32, #tpu.memory_space<vmem>>, vector<8x512xf32>
    %c0_1 = arith.constant 0 : index
    %c0_2 = arith.constant 0 : index
    %1 = vector.load %arg2[%c0_1, %c0_2] : memref<8x512xf32, #tpu.memory_space<vmem>>, vector<8x512xf32>
    %2 = arith.subf %0, %1 : vector<8x512xf32>
    %3 = math.absf %2 : vector<8x512xf32>
    %cst = arith.constant 1.000000e+00 : f32
    %4 = vector.broadcast %cst : f32 to vector<8x512xf32>
    %5 = arith.subf %4, %3 : vector<8x512xf32>
    %6 = arith.minimumf %3, %5 : vector<8x512xf32>
    %c0_3 = arith.constant 0 : index
    %c0_4 = arith.constant 0 : index
    %7 = vector.load %arg3[%c0_3, %c0_4] : memref<8x512xf32, #tpu.memory_space<vmem>>, vector<8x512xf32>
    tpu.vector_store %arg3[%c0_3, %c0_4], %6 {strides = array<i32>} : memref<8x512xf32, #tpu.memory_space<vmem>>, vector<8x512xf32>,
    return
  }
  func.func @transform_0(%arg0: i32) -> (i32, i32) {
    %c0_i32 = arith.constant 0 : i32
    %c0_i32_0 = arith.constant 0 : i32
    return %arg0, %c0_i32 : i32, i32
  }
  func.func @transform_1(%arg0: i32) -> (i32, i32) {
    %c0_i32 = arith.constant 0 : i32
    %c0_i32_0 = arith.constant 0 : i32
    return %arg0, %c0_i32 : i32, i32
  }
  func.func @transform_2(%arg0: i32) -> (i32, i32) {
    %c0_i32 = arith.constant 0 : i32
    %c0_i32_0 = arith.constant 0 : i32
    return %arg0, %c0_i32 : i32, i32
  }
}

</mosaic_0001>

<bundles_post_ra>
// kernel: tpu_custom_call.1
= control target key start
LH: loop header
LB: loop body
LE: loop exit
PB: predicated region body
PF: predicated region fallthrough
CT: control target
= control target key end

     0   :  { %7 = vsyncpa [#allocation3], 0  ;;  %s209_s0 = inlined_call_operand.hbm [shape: f32[8,512], index: 0, kind: input, shape index: {}]   ;;  %s210_s1 = inlined_call_operand.hbm [shape: f32[8,512], index: 1, kind: input, shape index: {}]   ;;  %s211_s2 = inlined_call_operand.hbm [shape: f32[8,512], index: 2, kind: output, shape index: {}]  }
   0x1   :  { %8 = vsyncpa [#allocation6], 0 }
   0x2   :  { %9 = vsyncpa [#allocation4], 0  ;;  %s155_s9 = smov [#allocation2]   ;;  %s156_s11 = smov [#allocation5]  }
   0x3   :  { %s16_s10 = sshll.u32 %s155_s9, 4  ;;  %s26_s12 = sshll.u32 %s156_s11, 4  ;;  %s17_s10 = int_to_ptr.vmem [resolvable:$true] %s16_s10  ;;  %s27_s12 = int_to_ptr.vmem [resolvable:$true] %s26_s12 }
   0x4   :  { %s83_s15 = scalar_lea.hbm %s209_s0, 512 }
   0x5   :  { %p84_p0 = scmp.ne.s32.totalorder %s209_s0, %s83_s15  ;;  %p87_p1 = scmp.lt.u32.totalorder %s83_s15, %s209_s0 }
   0x7   :  { %p89_p2 = pnand %p87_p1, %p84_p0 }
   0x9   :  { %92 = shalt.err (!%p89_p2)
}
   0xa   :  { %s93_s20 = scalar_lea.vmem %s17_s10, 512  ;;  %p98_p4 = scmp.lt.s32.totalorder %s17_s10, %s17_s10 }
   0xb   :  { %p94_p3 = scmp.ne.s32.totalorder %s17_s10, %s93_s20  ;;  %p99_p5 = scmp.lt.s32.totalorder %s93_s20, %s93_s20 }
   0xd   :  { %p100_p6 = por %p99_p5, %p98_p4 }
   0xf   :  { %p101_p7 = pnand %p100_p6, %p94_p3 }
  0x11   :  { %104 = shalt.err (!%p101_p7)
}
  0x12   :  { %19 = dma.hbm_to_vmem [thread:$0]  %s209_s0, 512, %s17_s10, [#allocation3]  }
  0x13   :  { %s105_s25 = scalar_lea.hbm %s210_s1, 512 }
  0x14   :  { %p106_p8 = scmp.ne.s32.totalorder %s210_s1, %s105_s25  ;;  %p109_p9 = scmp.lt.u32.totalorder %s105_s25, %s210_s1 }
  0x16   :  { %p111_p10 = pnand %p109_p9, %p106_p8 }
  0x18   :  { %114 = shalt.err (!%p111_p10)
}
  0x19   :  { %s115_s30 = scalar_lea.vmem %s27_s12, 512  ;;  %p120_p12 = scmp.lt.s32.totalorder %s27_s12, %s27_s12 }
  0x1a   :  { %p116_p11 = scmp.ne.s32.totalorder %s27_s12, %s115_s30  ;;  %p121_p13 = scmp.lt.s32.totalorder %s115_s30, %s115_s30 }
  0x1c   :  { %p122_p0 = por %p121_p13, %p120_p12 }
  0x1e   :  { %p123_p1 = pnand %p122_p0, %p116_p11 }
  0x20   :  { %126 = shalt.err (!%p123_p1)
}
  0x21   :  { %29 = dma.hbm_to_vmem [thread:$0]  %s210_s1, 512, %s27_s12, [#allocation6]  }
  0x22   :  { %149 = dma.done.wait [#allocation3], 512  }
  0x23   :  { %150 = vsyncadd [#allocation3], 4294966784 }
  0x24   :  { %151 = dma.done.wait [#allocation6], 512  }
  0x25   :  { %152 = vsyncadd [#allocation6], 4294966784  ;;  %v36_v0 = vld [vmem:[#allocation2] sm:$0xff]  ;;  %v37_v2 = vld [vmem:[#allocation2 + $0x8] sm:$0xff]  ;;  %s157_s1 = smov [#allocation7]  }
  0x26   :  { %v40_v1 = vld [vmem:[#allocation5] sm:$0xff]  ;;  %v41_v4 = vld [vmem:[#allocation5 + $0x8] sm:$0xff]  ;;  %v38_v5 = vld [vmem:[#allocation2 + $0x10] sm:$0xff]  ;;  %s70_s4 = sshll.u32 %s157_s1, 4  ;;  %s71_s4 = int_to_ptr.vmem [resolvable:$true] %s70_s4 }
  0x27   :  { %v44_v3 = vsub.f32 %v36_v0, %v40_v1  ;;  %v42_v6 = vld [vmem:[#allocation5 + $0x10] sm:$0xff]  ;;  %v45_v7 = vsub.f32 %v37_v2, %v41_v4  ;;  %v39_v9 = vld [vmem:[#allocation2 + $0x18] sm:$0xff]  ;;  %s127_s5 = scalar_lea.vmem %s71_s4, 512  ;;  %p132_p3 = scmp.lt.s32.totalorder %s71_s4, %s71_s4 }
  0x28   :  { %v46_v8 = vsub.f32 %v38_v5, %v42_v6  ;;  %v43_v10 = vld [vmem:[#allocation5 + $0x18] sm:$0xff]  ;;  %p128_p2 = scmp.ne.s32.totalorder %s71_s4, %s127_s5  ;;  %p133_p4 = scmp.lt.s32.totalorder %s127_s5, %s127_s5 }
  0x29   :  { %v48_v11 = vand.u32 2147483647, %v44_v3  ;;  %v47_v12 = vsub.f32 %v39_v9, %v43_v10  ;;  %v49_v13 = vand.u32 2147483647, %v45_v7 }
  0x2a   :  { %v50_v14 = vand.u32 2147483647, %v46_v8  ;;  %p134_p5 = por %p133_p4, %p132_p3 }
  0x2b   :  { %v52_v15 = vsub.f32 1.0, %v48_v11  ;;  %v51_v16 = vand.u32 2147483647, %v47_v12  ;;  %v53_v17 = vsub.f32 1.0, %v49_v13 }
  0x2c   :  { %v54_v18 = vsub.f32 1.0, %v50_v14  ;;  %p135_p6 = pnand %p134_p5, %p128_p2 }
  0x2d   :  { %v56_v19 = vmin.f32 %v48_v11, %v52_v15  ;;  %v55_v20 = vsub.f32 1.0, %v51_v16  ;;  %v57_v21 = vmin.f32 %v49_v13, %v53_v17 }
  0x2e   :  { %v58_v22 = vmin.f32 %v50_v14, %v54_v18 }
  0x2f   :  { %60 = vst [vmem:[#allocation7] sm:$0xff] %v56_v19  ;;  %v59_v23 = vmin.f32 %v51_v16, %v55_v20  ;;  %61 = vst [vmem:[#allocation7 + $0x8] sm:$0xff] %v57_v21 }
  0x30   :  { %62 = vst [vmem:[#allocation7 + $0x10] sm:$0xff] %v58_v22 }
  0x31   :  { %63 = vst [vmem:[#allocation7 + $0x18] sm:$0xff] %v59_v23 }
  0x32   :  { %138 = shalt.err (!%p135_p6)
}
  0x33   :  { %s139_s8 = scalar_lea.hbm %s211_s2, 512 }
  0x34   :  { %p140_p7 = scmp.ne.s32.totalorder %s211_s2, %s139_s8  ;;  %p143_p8 = scmp.lt.u32.totalorder %s139_s8, %s211_s2 }
  0x36   :  { %p145_p9 = pnand %p143_p8, %p140_p7 }
  0x38   :  { %148 = shalt.err (!%p145_p9)
}
  0x39   :  { %73 = dma.vmem_to_hbm [thread:$0]  %s71_s4, 512, %s211_s2, [#allocation4]  }
  0x3a   :  { %153 = dma.done.wait [#allocation4], 512  }
  0x3b   :  { %154 = vsyncadd [#allocation4], 4294966784 }
  0x3c   :  { %77 = vsyncpa [#allocation3], 1 }
  0x3d   :  { %78 = vsyncpa [#allocation6], 1 }
  0x3e   :  { %79 = vsyncpa [#allocation4], 1 }

</bundles_post_ra>
